<compile_context>
chip_gen: v7x
topology: tpu7x:2x2x1
jax: 0.10.0
libtpu: 0.0.40
codegen_flags: <defaults>
</compile_context>

<pallas_src>
import functools

import jax
import jax.numpy as jnp
from jax.experimental import pallas as pl
from jax.experimental.pallas import tpu as pltpu

LANE = 128
_NEG_BIG = -1e30  # bias for padded class columns -> exp underflows to 0


def _round_up(n, m):
    return ((n + m - 1) // m) * m


def _elu(x):
    # ELU, alpha=1.0 (F.elu default).  jnp.where evaluates BOTH branches; the
    # inner min() keeps exp() finite for large positive x.  Do not "simplify"
    # this back to exp(x) - 1 on the raw input.
    return jnp.where(x > 0, x, jnp.exp(jnp.minimum(x, 0.0)) - 1.0)


def _mlp_kernel(n_hidden, *refs):
    # refs = (x_ref, w0, b0, w1, b1, ..., wo, bo, out_ref)
    x_ref, out_ref = refs[0], refs[-1]
    p = refs[1:-1]

    h = x_ref[...].astype(jnp.float32)

    # Hidden layers: weights are (in, out), already carry the folded x2, and
    # may be bf16 -> cast only the dot operand, keep f32 activations/accum.
    for j in range(n_hidden):
        w = p[2 * j][...]
        b = p[2 * j + 1][...]
        y = jnp.dot(h.astype(w.dtype), w, preferred_element_type=jnp.float32) + b
        h = _elu(y)

    # Output layer + softmax over the (padded) class axis.
    wo = p[2 * n_hidden][...]
    bo = p[2 * n_hidden + 1][...]
    logits = jnp.dot(h.astype(wo.dtype), wo, preferred_element_type=jnp.float32) + bo

    m = jnp.max(logits, axis=-1, keepdims=True)
    e = jnp.exp(logits - m)
    denom = jnp.sum(e, axis=-1, keepdims=True)
    # Exact reciprocal -> rows sum to 1 (review flagged approx as a hazard).
    out_ref[...] = (e / denom).astype(out_ref.dtype)


def prepare_params(params, weight_dtype=jnp.bfloat16):
    """One-time param prep (NOT per forward call).

    Transposes every Linear weight to (in, out), folds the `2.0 *` of the
    doubled hidden-layer application into W/b, zero-pads the input-feature and
    all output dims up to multiples of 128 (lane-dense), and stores weights in
    `weight_dtype` (bf16 by default for the MXU fast path).  Biases stay f32.
    The output-layer bias is padded with -1e30 so padded classes vanish under
    softmax.
    """
    n_hidden = len(params) - 1
    prepped = []
    in_dim0 = params[0][0].shape[1]
    prev_out_pad = _round_up(in_dim0, LANE)  # input features padded to a lane multiple
    for idx, (w, b) in enumerate(params):
        out_dim, in_dim = w.shape
        is_hidden = idx < n_hidden

        wt = jnp.asarray(w, jnp.float32).T  # (in, out)
        bb = jnp.asarray(b, jnp.float32)
        if is_hidden:
            wt = wt * 2.0
            bb = bb * 2.0

        in_pad = prev_out_pad
        out_pad = _round_up(out_dim, LANE)

        wt_p = jnp.zeros((in_pad, out_pad), jnp.float32).at[:in_dim, :out_dim].set(wt)
        wt_p = wt_p.astype(weight_dtype)
        if is_hidden:
            b_p = jnp.zeros((1, out_pad), jnp.float32).at[0, :out_dim].set(bb)
        else:
            b_p = jnp.full((1, out_pad), _NEG_BIG, jnp.float32).at[0, :out_dim].set(bb)

        prepped.append((wt_p, b_p))
        prev_out_pad = out_pad
    return prepped


def _choose_batch_tiling(batch, max_tile_b):
    """Pick (tile_b, n_steps): tile_b a multiple of 8 with minimal tail padding,
    whole batch in one step when it fits, and an even number of grid steps when
    the batch spans multiple tiles (so both v7x TensorCores get work)."""
    max_tile_b = max(8, (max_tile_b // 8) * 8)
    n_steps = -(-batch // max_tile_b)
    if n_steps > 1 and n_steps % 2 == 1:
        n_even = n_steps + 1
        tile_even = _round_up(-(-batch // n_even), 8)
        if tile_even * (n_even - 1) < batch:  # never create an all-padding step
            return tile_even, n_even
    tile_b = _round_up(-(-batch // n_steps), 8)
    return tile_b, n_steps


def net_forward(x, prepped_params, n_classes, *, max_tile_b=512):
    """Forward pass.  `prepped_params` must come from prepare_params()."""
    n_hidden = len(prepped_params) - 1
    batch, in_dim = x.shape
    in_pad = prepped_params[0][0].shape[0]
    out_pad = prepped_params[-1][0].shape[1]
    assert in_dim <= in_pad, "input feature dim larger than prepped params expect"

    tile_b, n_steps = _choose_batch_tiling(batch, max_tile_b)
    b_pad = tile_b * n_steps

    # Lane-dense x: pad features to in_pad, batch to the tile grid (zeros).
    if (b_pad, in_pad) != (batch, in_dim):
        x = jnp.pad(x, ((0, b_pad - batch), (0, in_pad - in_dim)))

    flat_args = [x]
    weight_bytes = 0
    for w, b in prepped_params:
        flat_args += [w, b]
        weight_bytes += w.size * w.dtype.itemsize + b.size * b.dtype.itemsize

    # Advisory cost estimate (helps XLA schedule around this call).
    flops = 2 * b_pad * sum(int(w.shape[0]) * int(w.shape[1]) for w, _ in prepped_params)
    transcendentals = b_pad * sum(int(w.shape[1]) for w, _ in prepped_params)
    bytes_accessed = (x.size * x.dtype.itemsize) + weight_bytes + b_pad * out_pad * 4
    cost = pl.CostEstimate(
        flops=int(flops),
        transcendentals=int(transcendentals),
        bytes_accessed=int(bytes_accessed),
    )

    # Explicit VMEM budget: resident weights + double-buffered x/out tiles +
    # headroom for in-kernel intermediates.  Capped at 64 MiB (v7x physical).
    max_w = max([in_pad, out_pad] + [int(w.shape[1]) for w, _ in prepped_params])
    vmem_est = (
        weight_bytes
        + 2 * tile_b * (in_pad + out_pad) * 4
        + 4 * tile_b * max_w * 4
    )
    vmem_limit = int(min(max(2 * vmem_est, 32 * 2**20), 64 * 2**20))

    kernel = functools.partial(_mlp_kernel, n_hidden)
    out_shape = jax.ShapeDtypeStruct((b_pad, out_pad), jnp.float32)
    x_spec = pl.BlockSpec((tile_b, in_pad), lambda i: (i, 0))
    out_spec = pl.BlockSpec((tile_b, out_pad), lambda i: (i, 0))
    cparams = pltpu.CompilerParams(
        dimension_semantics=("parallel",),  # shard batch tiles across TCs (v7x)
        vmem_limit_bytes=vmem_limit,
    )

    def build(single_buffer_weights):
        spec_kwargs = (
            dict(pipeline_mode=pl.Buffered(1)) if single_buffer_weights else {}
        )
        in_specs = [x_spec]
        for w, b in prepped_params:
            # Constant index_map -> block never changes -> stays VMEM-resident;
            # Buffered(1) avoids allocating a useless second buffer.
            in_specs += [
                pl.BlockSpec(w.shape, lambda i: (0, 0), **spec_kwargs),
                pl.BlockSpec(b.shape, lambda i: (0, 0), **spec_kwargs),
            ]
        return pl.pallas_call(
            kernel,
            out_shape=out_shape,
            grid=(n_steps,),
            in_specs=in_specs,
            out_specs=out_spec,
            compiler_params=cparams,
            cost_estimate=cost,
        )

    try:
        out = build(single_buffer_weights=True)(*flat_args)
    except Exception:
        # pl.Buffered(1) (single-buffered resident weights) unsupported on this
        # jax/backend combo -> fall back to default double buffering.
        out = build(single_buffer_weights=False)(*flat_args)

    return out[:batch, :n_classes]


def init_params(key, input_size, hidden_dim, n_classes, layers):
    """PyTorch-Linear-style init: U(-1/sqrt(fan_in), 1/sqrt(fan_in)); W is (out, in)."""
    params = []
    current = input_size
    dims = [hidden_dim] * layers + [n_classes]
    for out_dim in dims:
        key, kw, kb = jax.random.split(key, 3)
        bound = 1.0 / jnp.sqrt(jnp.float32(current))
        w = jax.random.uniform(kw, (out_dim, current), jnp.float32, -bound, bound)
        b = jax.random.uniform(kb, (out_dim,), jnp.float32, -bound, bound)
        params.append((w, b))
        current = out_dim
    return params


def net_forward_ref(x, params):
    """Pure-JAX (f32) reference mirroring the PyTorch forward exactly."""
    h = x
    for w, b in params[:-1]:
        h = jax.nn.elu(2.0 * (h @ w.T + b))
    wo, bo = params[-1]
    return jax.nn.softmax(h @ wo.T + bo, axis=-1)


def net_forward_ref_prepped(x, prepped_params, n_classes):
    """Pure-JAX mirror of the kernel math on the prepped (padded / bf16) params."""
    in_pad = prepped_params[0][0].shape[0]
    h = jnp.pad(x, ((0, 0), (0, in_pad - x.shape[1]))).astype(jnp.float32)
    for w, b in prepped_params[:-1]:
        y = jnp.dot(h.astype(w.dtype), w, preferred_element_type=jnp.float32) + b
        h = _elu(y)
    wo, bo = prepped_params[-1]
    logits = jnp.dot(h.astype(wo.dtype), wo, preferred_element_type=jnp.float32) + bo
    return jax.nn.softmax(logits, axis=-1)[:, :n_classes]


if __name__ == "__main__":
    # Small shapes consistent with the module.
    batch, input_size, hidden_dim, n_classes, layers = 8, 32, 32, 16, 2

    key = jax.random.PRNGKey(0)
    key, kx = jax.random.split(key)
    x = jax.random.normal(kx, (batch, input_size), jnp.float32)

    params = init_params(key, input_size, hidden_dim, n_classes, layers)
    ref = net_forward_ref(x, params)

    # 1) f32 weights: numerics track the PyTorch-mirroring reference tightly.
    prepped_f32 = prepare_params(params, weight_dtype=jnp.float32)
    out_f32 = jax.block_until_ready(net_forward(x, prepped_f32, n_classes))
    assert out_f32.shape == (batch, n_classes)
    assert jnp.allclose(out_f32, ref, atol=1e-3, rtol=1e-3), float(
        jnp.max(jnp.abs(out_f32 - ref)))

    # 2) bf16 weights (default MXU fast path): tight vs a numerics-matched
    #    reference, loose vs the pure-f32 reference.
    prepped_bf16 = prepare_params(params)
    out_bf16 = jax.block_until_ready(net_forward(x, prepped_bf16, n_classes))
    ref_bf16 = net_forward_ref_prepped(x, prepped_bf16, n_classes)
    assert jnp.allclose(out_bf16, ref_bf16, atol=1e-3, rtol=1e-3), float(
        jnp.max(jnp.abs(out_bf16 - ref_bf16)))
    assert jnp.allclose(out_bf16, ref, atol=5e-2, rtol=5e-2), float(
        jnp.max(jnp.abs(out_bf16 - ref)))
    assert jnp.allclose(jnp.sum(out_bf16, axis=-1), 1.0, atol=1e-3)

    # 3) Larger batch: exercises multi-step grid (even #steps for v7x megacore),
    #    batch-tail padding, and feature padding.
    xb = jax.random.normal(jax.random.PRNGKey(1), (600, input_size), jnp.float32)
    out_b = jax.block_until_ready(net_forward(xb, prepped_bf16, n_classes))
    ref_b = net_forward_ref_prepped(xb, prepped_bf16, n_classes)
    assert out_b.shape == (600, n_classes)
    assert jnp.allclose(out_b, ref_b, atol=1e-3, rtol=1e-3), float(
        jnp.max(jnp.abs(out_b - ref_b)))

    print("KERNEL_OK")
</pallas_src>

<mosaic_0001>
module attributes {stable_mosaic.version = 11 : i64} {
  func.func @_mlp_kernel(%arg0: i32, %arg1: memref<8x128xf32, #tpu.memory_space<vmem>>, %arg2: memref<128x128xf32, #tpu.memory_space<vmem>>, %arg3: memref<1x128xf32, #tpu.memory_space<vmem>>, %arg4: memref<128x128xf32, #tpu.memory_space<vmem>>, %arg5: memref<1x128xf32, #tpu.memory_space<vmem>>, %arg6: memref<128x128xf32, #tpu.memory_space<vmem>>, %arg7: memref<1x128xf32, #tpu.memory_space<vmem>>, %arg8: memref<8x128xf32, #tpu.memory_space<vmem>>) attributes {dimension_semantics = [#tpu.dimension_semantics<parallel>], iteration_bounds = array<i64: 1>, scalar_prefetch = 0 : i64, scratch_operands = 0 : i64, tpu.core_type = #tpu.core_type<tc>, window_params = [{transform_indices = @transform_0, window_bounds = array<i64: 8, 128>}, {pipeline_mode = #tpu.pipeline_mode<synchronous>, transform_indices = @transform_1, window_bounds = array<i64: 128, 128>}, {pipeline_mode = #tpu.pipeline_mode<synchronous>, transform_indices = @transform_2, window_bounds = array<i64: 1, 128>}, {pipeline_mode = #tpu.pipeline_mode<synchronous>, transform_indices = @transform_3, window_bounds = array<i64: 128, 128>}, {pipeline_mode = #tpu.pipeline_mode<synchronous>, transform_indices = @transform_4, window_bounds = array<i64: 1, 128>}, {pipeline_mode = #tpu.pipeline_mode<synchronous>, transform_indices = @transform_5, window_bounds = array<i64: 128, 128>}, {pipeline_mode = #tpu.pipeline_mode<synchronous>, transform_indices = @transform_6, window_bounds = array<i64: 1, 128>}, {transform_indices = @transform_7, window_bounds = array<i64: 8, 128>}]} {
    %c0 = arith.constant 0 : index
    %c0_0 = arith.constant 0 : index
    %0 = vector.load %arg1[%c0, %c0_0] : memref<8x128xf32, #tpu.memory_space<vmem>>, vector<8x128xf32>
    %c0_1 = arith.constant 0 : index
    %c0_2 = arith.constant 0 : index
    %1 = vector.load %arg2[%c0_1, %c0_2] : memref<128x128xf32, #tpu.memory_space<vmem>>, vector<128x128xf32>
    %c0_3 = arith.constant 0 : index
    %c0_4 = arith.constant 0 : index
    %2 = vector.load %arg3[%c0_3, %c0_4] : memref<1x128xf32, #tpu.memory_space<vmem>>, vector<1x128xf32>
    %cst = arith.constant dense<0.000000e+00> : vector<8x128xf32>
    %3 = tpu.matmul %0, %1, %cst {dimension_numbers = #tpu.dot_dimension_numbers<[1], [0], [0], [1], [0, 0, 1, 1], [], []>} : vector<8x128xf32>, vector<128x128xf32>, vector<8x128xf32> -> vector<8x128xf32>
    %4 = vector.broadcast %2 : vector<1x128xf32> to vector<8x128xf32>
    %5 = arith.addf %3, %4 : vector<8x128xf32>
    %cst_5 = arith.constant 0.000000e+00 : f32
    %6 = vector.broadcast %cst_5 : f32 to vector<8x128xf32>
    %7 = arith.cmpf ogt, %5, %6 : vector<8x128xf32>
    %cst_6 = arith.constant 0.000000e+00 : f32
    %8 = vector.broadcast %cst_6 : f32 to vector<8x128xf32>
    %9 = arith.minimumf %5, %8 : vector<8x128xf32>
    %10 = math.exp %9 : vector<8x128xf32>
    %cst_7 = arith.constant 1.000000e+00 : f32
    %11 = vector.broadcast %cst_7 : f32 to vector<8x128xf32>
    %12 = arith.subf %10, %11 : vector<8x128xf32>
    %13 = arith.select %7, %5, %12 : vector<8x128xi1>, vector<8x128xf32>
    %c0_8 = arith.constant 0 : index
    %c0_9 = arith.constant 0 : index
    %14 = vector.load %arg4[%c0_8, %c0_9] : memref<128x128xf32, #tpu.memory_space<vmem>>, vector<128x128xf32>
    %c0_10 = arith.constant 0 : index
    %c0_11 = arith.constant 0 : index
    %15 = vector.load %arg5[%c0_10, %c0_11] : memref<1x128xf32, #tpu.memory_space<vmem>>, vector<1x128xf32>
    %cst_12 = arith.constant dense<0.000000e+00> : vector<8x128xf32>
    %16 = tpu.matmul %13, %14, %cst_12 {dimension_numbers = #tpu.dot_dimension_numbers<[1], [0], [0], [1], [0, 0, 1, 1], [], []>} : vector<8x128xf32>, vector<128x128xf32>, vector<8x128xf32> -> vector<8x128xf32>
    %17 = vector.broadcast %15 : vector<1x128xf32> to vector<8x128xf32>
    %18 = arith.addf %16, %17 : vector<8x128xf32>
    %cst_13 = arith.constant 0.000000e+00 : f32
    %19 = vector.broadcast %cst_13 : f32 to vector<8x128xf32>
    %20 = arith.cmpf ogt, %18, %19 : vector<8x128xf32>
    %cst_14 = arith.constant 0.000000e+00 : f32
    %21 = vector.broadcast %cst_14 : f32 to vector<8x128xf32>
    %22 = arith.minimumf %18, %21 : vector<8x128xf32>
    %23 = math.exp %22 : vector<8x128xf32>
    %cst_15 = arith.constant 1.000000e+00 : f32
    %24 = vector.broadcast %cst_15 : f32 to vector<8x128xf32>
    %25 = arith.subf %23, %24 : vector<8x128xf32>
    %26 = arith.select %20, %18, %25 : vector<8x128xi1>, vector<8x128xf32>
    %c0_16 = arith.constant 0 : index
    %c0_17 = arith.constant 0 : index
    %27 = vector.load %arg6[%c0_16, %c0_17] : memref<128x128xf32, #tpu.memory_space<vmem>>, vector<128x128xf32>
    %c0_18 = arith.constant 0 : index
    %c0_19 = arith.constant 0 : index
    %28 = vector.load %arg7[%c0_18, %c0_19] : memref<1x128xf32, #tpu.memory_space<vmem>>, vector<1x128xf32>
    %cst_20 = arith.constant dense<0.000000e+00> : vector<8x128xf32>
    %29 = tpu.matmul %26, %27, %cst_20 {dimension_numbers = #tpu.dot_dimension_numbers<[1], [0], [0], [1], [0, 0, 1, 1], [], []>} : vector<8x128xf32>, vector<128x128xf32>, vector<8x128xf32> -> vector<8x128xf32>
    %30 = vector.broadcast %28 : vector<1x128xf32> to vector<8x128xf32>
    %31 = arith.addf %29, %30 : vector<8x128xf32>
    %cst_21 = arith.constant dense<0xFF800000> : vector<8xf32>
    %32 = vector.multi_reduction <maximumf>, %31, %cst_21 [1] : vector<8x128xf32> to vector<8xf32>
    %33 = vector.shape_cast %32 : vector<8xf32> to vector<8x1xf32>
    %34 = vector.broadcast %33 : vector<8x1xf32> to vector<8x128xf32>
    %35 = arith.subf %31, %34 : vector<8x128xf32>
    %36 = math.exp %35 : vector<8x128xf32>
    %cst_22 = arith.constant dense<0.000000e+00> : vector<8xf32>
    %37 = vector.multi_reduction <add>, %36, %cst_22 [1] : vector<8x128xf32> to vector<8xf32>
    %38 = vector.shape_cast %37 : vector<8xf32> to vector<8x1xf32>
    %39 = vector.broadcast %38 : vector<8x1xf32> to vector<8x128xf32>
    %40 = arith.divf %36, %39 : vector<8x128xf32>
    %c0_23 = arith.constant 0 : index
    %c0_24 = arith.constant 0 : index
    %41 = vector.load %arg8[%c0_23, %c0_24] : memref<8x128xf32, #tpu.memory_space<vmem>>, vector<8x128xf32>
    tpu.vector_store %arg8[%c0_23, %c0_24], %40 {strides = array<i32>} : memref<8x128xf32, #tpu.memory_space<vmem>>, vector<8x128xf32>,
    return
  }
  func.func @transform_0(%arg0: i32) -> (i32, i32) {
    %c0_i32 = arith.constant 0 : i32
    %c0_i32_0 = arith.constant 0 : i32
    return %arg0, %c0_i32 : i32, i32
  }
  func.func @transform_1(%arg0: i32) -> (i32, i32) {
    %c0_i32 = arith.constant 0 : i32
    %c0_i32_0 = arith.constant 0 : i32
    %c0_i32_1 = arith.constant 0 : i32
    return %c0_i32, %c0_i32_0 : i32, i32
  }
  func.func @transform_2(%arg0: i32) -> (i32, i32) {
    %c0_i32 = arith.constant 0 : i32
    %c0_i32_0 = arith.constant 0 : i32
    %c0_i32_1 = arith.constant 0 : i32
    return %c0_i32, %c0_i32_0 : i32, i32
  }
  func.func @transform_3(%arg0: i32) -> (i32, i32) {
    %c0_i32 = arith.constant 0 : i32
    %c0_i32_0 = arith.constant 0 : i32
    %c0_i32_1 = arith.constant 0 : i32
    return %c0_i32, %c0_i32_0 : i32, i32
  }
  func.func @transform_4(%arg0: i32) -> (i32, i32) {
    %c0_i32 = arith.constant 0 : i32
    %c0_i32_0 = arith.constant 0 : i32
    %c0_i32_1 = arith.constant 0 : i32
    return %c0_i32, %c0_i32_0 : i32, i32
  }
  func.func @transform_5(%arg0: i32) -> (i32, i32) {
    %c0_i32 = arith.constant 0 : i32
    %c0_i32_0 = arith.constant 0 : i32
    %c0_i32_1 = arith.constant 0 : i32
    return %c0_i32, %c0_i32_0 : i32, i32
  }
  func.func @transform_6(%arg0: i32) -> (i32, i32) {
    %c0_i32 = arith.constant 0 : i32
    %c0_i32_0 = arith.constant 0 : i32
    %c0_i32_1 = arith.constant 0 : i32
    return %c0_i32, %c0_i32_0 : i32, i32
  }
  func.func @transform_7(%arg0: i32) -> (i32, i32) {
    %c0_i32 = arith.constant 0 : i32
    %c0_i32_0 = arith.constant 0 : i32
    return %arg0, %c0_i32 : i32, i32
  }
}

module attributes {stable_mosaic.version = 11 : i64} {
  func.func @_mlp_kernel(%arg0: i32, %arg1: memref<8x128xf32, #tpu.memory_space<vmem>>, %arg2: memref<128x128xf32, #tpu.memory_space<vmem>>, %arg3: memref<1x128xf32, #tpu.memory_space<vmem>>, %arg4: memref<128x128xf32, #tpu.memory_space<vmem>>, %arg5: memref<1x128xf32, #tpu.memory_space<vmem>>, %arg6: memref<128x128xf32, #tpu.memory_space<vmem>>, %arg7: memref<1x128xf32, #tpu.memory_space<vmem>>, %arg8: memref<8x128xf32, #tpu.memory_space<vmem>>) attributes {dimension_semantics = [#tpu.dimension_semantics<parallel>], iteration_bounds = array<i64: 1>, scalar_prefetch = 0 : i64, scratch_operands = 0 : i64, tpu.core_type = #tpu.core_type<tc>, window_params = [{transform_indices = @transform_0, window_bounds = array<i64: 8, 128>}, {pipeline_mode = #tpu.pipeline_mode<synchronous>, transform_indices = @transform_1, window_bounds = array<i64: 128, 128>}, {pipeline_mode = #tpu.pipeline_mode<synchronous>, transform_indices = @transform_2, window_bounds = array<i64: 1, 128>}, {pipeline_mode = #tpu.pipeline_mode<synchronous>, transform_indices = @transform_3, window_bounds = array<i64: 128, 128>}, {pipeline_mode = #tpu.pipeline_mode<synchronous>, transform_indices = @transform_4, window_bounds = array<i64: 1, 128>}, {pipeline_mode = #tpu.pipeline_mode<synchronous>, transform_indices = @transform_5, window_bounds = array<i64: 128, 128>}, {pipeline_mode = #tpu.pipeline_mode<synchronous>, transform_indices = @transform_6, window_bounds = array<i64: 1, 128>}, {transform_indices = @transform_7, window_bounds = array<i64: 8, 128>}]} {
    %c0 = arith.constant 0 : index
    %c0_0 = arith.constant 0 : index
    %0 = vector.load %arg1[%c0, %c0_0] : memref<8x128xf32, #tpu.memory_space<vmem>>, vector<8x128xf32>
    %c0_1 = arith.constant 0 : index
    %c0_2 = arith.constant 0 : index
    %1 = vector.load %arg2[%c0_1, %c0_2] : memref<128x128xf32, #tpu.memory_space<vmem>>, vector<128x128xf32>
    %c0_3 = arith.constant 0 : index
    %c0_4 = arith.constant 0 : index
    %2 = vector.load %arg3[%c0_3, %c0_4] : memref<1x128xf32, #tpu.memory_space<vmem>>, vector<1x128xf32>
    %cst = arith.constant dense<0.000000e+00> : vector<8x128xf32>
    %3 = tpu.matmul %0, %1, %cst {dimension_numbers = #tpu.dot_dimension_numbers<[1], [0], [0], [1], [0, 0, 1, 1], [], []>} : vector<8x128xf32>, vector<128x128xf32>, vector<8x128xf32> -> vector<8x128xf32>
    %4 = vector.broadcast %2 : vector<1x128xf32> to vector<8x128xf32>
    %5 = arith.addf %3, %4 : vector<8x128xf32>
    %cst_5 = arith.constant 0.000000e+00 : f32
    %6 = vector.broadcast %cst_5 : f32 to vector<8x128xf32>
    %7 = arith.cmpf ogt, %5, %6 : vector<8x128xf32>
    %cst_6 = arith.constant 0.000000e+00 : f32
    %8 = vector.broadcast %cst_6 : f32 to vector<8x128xf32>
    %9 = arith.minimumf %5, %8 : vector<8x128xf32>
    %10 = math.exp %9 : vector<8x128xf32>
    %cst_7 = arith.constant 1.000000e+00 : f32
    %11 = vector.broadcast %cst_7 : f32 to vector<8x128xf32>
    %12 = arith.subf %10, %11 : vector<8x128xf32>
    %13 = arith.select %7, %5, %12 : vector<8x128xi1>, vector<8x128xf32>
    %c0_8 = arith.constant 0 : index
    %c0_9 = arith.constant 0 : index
    %14 = vector.load %arg4[%c0_8, %c0_9] : memref<128x128xf32, #tpu.memory_space<vmem>>, vector<128x128xf32>
    %c0_10 = arith.constant 0 : index
    %c0_11 = arith.constant 0 : index
    %15 = vector.load %arg5[%c0_10, %c0_11] : memref<1x128xf32, #tpu.memory_space<vmem>>, vector<1x128xf32>
    %cst_12 = arith.constant dense<0.000000e+00> : vector<8x128xf32>
    %16 = tpu.matmul %13, %14, %cst_12 {dimension_numbers = #tpu.dot_dimension_numbers<[1], [0], [0], [1], [0, 0, 1, 1], [], []>} : vector<8x128xf32>, vector<128x128xf32>, vector<8x128xf32> -> vector<8x128xf32>
    %17 = vector.broadcast %15 : vector<1x128xf32> to vector<8x128xf32>
    %18 = arith.addf %16, %17 : vector<8x128xf32>
    %cst_13 = arith.constant 0.000000e+00 : f32
    %19 = vector.broadcast %cst_13 : f32 to vector<8x128xf32>
    %20 = arith.cmpf ogt, %18, %19 : vector<8x128xf32>
    %cst_14 = arith.constant 0.000000e+00 : f32
    %21 = vector.broadcast %cst_14 : f32 to vector<8x128xf32>
    %22 = arith.minimumf %18, %21 : vector<8x128xf32>
    %23 = math.exp %22 : vector<8x128xf32>
    %cst_15 = arith.constant 1.000000e+00 : f32
    %24 = vector.broadcast %cst_15 : f32 to vector<8x128xf32>
    %25 = arith.subf %23, %24 : vector<8x128xf32>
    %26 = arith.select %20, %18, %25 : vector<8x128xi1>, vector<8x128xf32>
    %c0_16 = arith.constant 0 : index
    %c0_17 = arith.constant 0 : index
    %27 = vector.load %arg6[%c0_16, %c0_17] : memref<128x128xf32, #tpu.memory_space<vmem>>, vector<128x128xf32>
    %c0_18 = arith.constant 0 : index
    %c0_19 = arith.constant 0 : index
    %28 = vector.load %arg7[%c0_18, %c0_19] : memref<1x128xf32, #tpu.memory_space<vmem>>, vector<1x128xf32>
    %cst_20 = arith.constant dense<0.000000e+00> : vector<8x128xf32>
    %29 = tpu.matmul %26, %27, %cst_20 {dimension_numbers = #tpu.dot_dimension_numbers<[1], [0], [0], [1], [0, 0, 1, 1], [], []>} : vector<8x128xf32>, vector<128x128xf32>, vector<8x128xf32> -> vector<8x128xf32>
    %30 = vector.broadcast %28 : vector<1x128xf32> to vector<8x128xf32>
    %31 = arith.addf %29, %30 : vector<8x128xf32>
    %cst_21 = arith.constant dense<0xFF800000> : vector<8xf32>
    %32 = vector.multi_reduction <maximumf>, %31, %cst_21 [1] : vector<8x128xf32> to vector<8xf32>
    %33 = vector.shape_cast %32 : vector<8xf32> to vector<8x1xf32>
    %34 = vector.broadcast %33 : vector<8x1xf32> to vector<8x128xf32>
    %35 = arith.subf %31, %34 : vector<8x128xf32>
    %36 = math.exp %35 : vector<8x128xf32>
    %cst_22 = arith.constant dense<0.000000e+00> : vector<8xf32>
    %37 = vector.multi_reduction <add>, %36, %cst_22 [1] : vector<8x128xf32> to vector<8xf32>
    %38 = vector.shape_cast %37 : vector<8xf32> to vector<8x1xf32>
    %39 = vector.broadcast %38 : vector<8x1xf32> to vector<8x128xf32>
    %40 = arith.divf %36, %39 : vector<8x128xf32>
    %c0_23 = arith.constant 0 : index
    %c0_24 = arith.constant 0 : index
    %41 = vector.load %arg8[%c0_23, %c0_24] : memref<8x128xf32, #tpu.memory_space<vmem>>, vector<8x128xf32>
    tpu.vector_store %arg8[%c0_23, %c0_24], %40 {strides = array<i32>} : memref<8x128xf32, #tpu.memory_space<vmem>>, vector<8x128xf32>,
    return
  }
  func.func @transform_0(%arg0: i32) -> (i32, i32) {
    %c0_i32 = arith.constant 0 : i32
    %c0_i32_0 = arith.constant 0 : i32
    return %arg0, %c0_i32 : i32, i32
  }
  func.func @transform_1(%arg0: i32) -> (i32, i32) {
    %c0_i32 = arith.constant 0 : i32
    %c0_i32_0 = arith.constant 0 : i32
    %c0_i32_1 = arith.constant 0 : i32
    return %c0_i32, %c0_i32_0 : i32, i32
  }
  func.func @transform_2(%arg0: i32) -> (i32, i32) {
    %c0_i32 = arith.constant 0 : i32
    %c0_i32_0 = arith.constant 0 : i32
    %c0_i32_1 = arith.constant 0 : i32
    return %c0_i32, %c0_i32_0 : i32, i32
  }
  func.func @transform_3(%arg0: i32) -> (i32, i32) {
    %c0_i32 = arith.constant 0 : i32
    %c0_i32_0 = arith.constant 0 : i32
    %c0_i32_1 = arith.constant 0 : i32
    return %c0_i32, %c0_i32_0 : i32, i32
  }
  func.func @transform_4(%arg0: i32) -> (i32, i32) {
    %c0_i32 = arith.constant 0 : i32
    %c0_i32_0 = arith.constant 0 : i32
    %c0_i32_1 = arith.constant 0 : i32
    return %c0_i32, %c0_i32_0 : i32, i32
  }
  func.func @transform_5(%arg0: i32) -> (i32, i32) {
    %c0_i32 = arith.constant 0 : i32
    %c0_i32_0 = arith.constant 0 : i32
    %c0_i32_1 = arith.constant 0 : i32
    return %c0_i32, %c0_i32_0 : i32, i32
  }
  func.func @transform_6(%arg0: i32) -> (i32, i32) {
    %c0_i32 = arith.constant 0 : i32
    %c0_i32_0 = arith.constant 0 : i32
    %c0_i32_1 = arith.constant 0 : i32
    return %c0_i32, %c0_i32_0 : i32, i32
  }
  func.func @transform_7(%arg0: i32) -> (i32, i32) {
    %c0_i32 = arith.constant 0 : i32
    %c0_i32_0 = arith.constant 0 : i32
    return %arg0, %c0_i32 : i32, i32
  }
}

</mosaic_0001>

<bundles_post_ra>
// kernel: tpu_custom_call.1
= control target key start
LH: loop header
LB: loop body
LE: loop exit
PB: predicated region body
PF: predicated region fallthrough
CT: control target
= control target key end

     0   :  { %12 = vsyncpa [#allocation3], 0  ;;  %s923_s0 = inlined_call_operand.hbm [shape: f32[8,128], index: 0, kind: input, shape index: {}]   ;;  %s924_s1 = inlined_call_operand.hbm [shape: f32[128,128], index: 1, kind: input, shape index: {}]   ;;  %s925_s2 = inlined_call_operand.vmem [shape: f32[1,128], index: 2, kind: input, shape index: {}]   ;;  %s926_s3 = inlined_call_operand.hbm [shape: f32[128,128], index: 3, kind: input, shape index: {}]   ;;  %s927_s4 = inlined_call_operand.vmem [shape: f32[1,128], index: 4, kind: input, shape index: {}]   ;;  %s928_s5 = inlined_call_operand.hbm [shape: f32[128,128], index: 5, kind: input, shape index: {}]   ;;  %s929_s6 = inlined_call_operand.vmem [shape: f32[1,128], index: 6, kind: input, shape index: {}]   ;;  %s930_s7 = inlined_call_operand.hbm [shape: f32[8,128], index: 7, kind: output, shape index: {}]  }
   0x1   :  { %13 = vsyncpa [#allocation6], 0 }
   0x2   :  { %14 = vsyncpa [#allocation9], 0 }
   0x3   :  { %15 = vsyncpa [#allocation4], 0  ;;  %s768_s24 = smov [#allocation5]   ;;  %s650_s28 = scalar_lea.hbm %s924_s1, 2048 }
   0x4   :  { %s31_s25 = sshll.u32 %s768_s24, 4  ;;  %p651_p0 = scmp.ne.s32.totalorder %s924_s1, %s650_s28  ;;  %s32_s25 = int_to_ptr.vmem [resolvable:$true] %s31_s25 }
   0x5   :  { %p654_p1 = scmp.lt.u32.totalorder %s650_s28, %s924_s1 }
   0x7   :  { %p656_p2 = pnand %p654_p1, %p651_p0 }
   0x9   :  { %659 = shalt.err (!%p656_p2)
}
   0xa   :  { %s660_s10 = scalar_lea.vmem %s32_s25, 2048  ;;  %p665_p4 = scmp.lt.s32.totalorder %s32_s25, %s32_s25 }
   0xb   :  { %p661_p3 = scmp.ne.s32.totalorder %s32_s25, %s660_s10  ;;  %p666_p5 = scmp.lt.s32.totalorder %s660_s10, %s660_s10 }
   0xd   :  { %p667_p6 = por %p666_p5, %p665_p4 }
   0xf   :  { %p668_p7 = pnand %p667_p6, %p661_p3 }
  0x11   :  { %671 = shalt.err (!%p668_p7)
}
  0x12   :  { %s769_s11 = smov 128   ;;  %s770_s12 = smov 8  }
  0x13   :  { %37 = dma.hbm_to_vmem [thread:$0]  %s924_s1, 2048, %s32_s25, [#allocation6], %s769_s11, %s769_s11, %s770_s12  }
  0x14   :  { %s771_s15 = smov [#allocation2]   ;;  %s772_s17 = smov [#allocation7]  }
  0x15   :  { %s22_s16 = sshll.u32 %s771_s15, 4  ;;  %s45_s18 = sshll.u32 %s772_s17, 4  ;;  %s23_s16 = int_to_ptr.vmem [resolvable:$true] %s22_s16  ;;  %s46_s18 = int_to_ptr.vmem [resolvable:$true] %s45_s18 }
  0x16   :  { %s672_s21 = scalar_lea.hbm %s923_s0, 128 }
  0x17   :  { %p673_p8 = scmp.ne.s32.totalorder %s923_s0, %s672_s21  ;;  %p676_p9 = scmp.lt.u32.totalorder %s672_s21, %s923_s0 }
  0x19   :  { %p678_p10 = pnand %p676_p9, %p673_p8 }
  0x1b   :  { %681 = shalt.err (!%p678_p10)
}
  0x1c   :  { %s682_s1 = scalar_lea.vmem %s23_s16, 128  ;;  %p687_p12 = scmp.lt.s32.totalorder %s23_s16, %s23_s16 }
  0x1d   :  { %p683_p11 = scmp.ne.s32.totalorder %s23_s16, %s682_s1  ;;  %p688_p13 = scmp.lt.s32.totalorder %s682_s1, %s682_s1 }
  0x1f   :  { %p689_p0 = por %p688_p13, %p687_p12 }
  0x21   :  { %p690_p1 = pnand %p689_p0, %p683_p11 }
  0x23   :  { %693 = shalt.err (!%p690_p1)
}
  0x24   :  { %25 = dma.hbm_to_vmem [thread:$0]  %s923_s0, 128, %s23_s16, [#allocation3]  }
  0x25   :  { %s694_s30 = scalar_lea.hbm %s926_s3, 2048 }
  0x26   :  { %p695_p2 = scmp.ne.s32.totalorder %s926_s3, %s694_s30  ;;  %p698_p3 = scmp.lt.u32.totalorder %s694_s30, %s926_s3 }
  0x28   :  { %p700_p4 = pnand %p698_p3, %p695_p2 }
  0x2a   :  { %703 = shalt.err (!%p700_p4)
}
  0x2b   :  { %s704_s14 = scalar_lea.vmem %s46_s18, 2048  ;;  %p709_p6 = scmp.lt.s32.totalorder %s46_s18, %s46_s18 }
  0x2c   :  { %p705_p5 = scmp.ne.s32.totalorder %s46_s18, %s704_s14  ;;  %p710_p7 = scmp.lt.s32.totalorder %s704_s14, %s704_s14 }
  0x2e   :  { %p711_p8 = por %p710_p7, %p709_p6 }
  0x30   :  { %p712_p9 = pnand %p711_p8, %p705_p5 }
  0x32   :  { %715 = shalt.err (!%p712_p9)
}
  0x33   :  { %51 = dma.hbm_to_vmem [thread:$0]  %s926_s3, 2048, %s46_s18, [#allocation6], %s769_s11, %s769_s11, %s770_s12  }
  0x34   :  { %s773_s16 = smov [#allocation8]   ;;  %s716_s21 = scalar_lea.hbm %s928_s5, 2048 }
  0x35   :  { %s59_s17 = sshll.u32 %s773_s16, 4  ;;  %p717_p10 = scmp.ne.s32.totalorder %s928_s5, %s716_s21  ;;  %s60_s17 = int_to_ptr.vmem [resolvable:$true] %s59_s17 }
  0x36   :  { %p720_p11 = scmp.lt.u32.totalorder %s716_s21, %s928_s5 }
  0x38   :  { %p722_p12 = pnand %p720_p11, %p717_p10 }
  0x3a   :  { %725 = shalt.err (!%p722_p12)
}
  0x3b   :  { %s726_s1 = scalar_lea.vmem %s60_s17, 2048  ;;  %p731_p0 = scmp.lt.s32.totalorder %s60_s17, %s60_s17 }
  0x3c   :  { %p727_p13 = scmp.ne.s32.totalorder %s60_s17, %s726_s1  ;;  %p732_p1 = scmp.lt.s32.totalorder %s726_s1, %s726_s1 }
  0x3e   :  { %p733_p2 = por %p732_p1, %p731_p0 }
  0x40   :  { %p734_p3 = pnand %p733_p2, %p727_p13 }
  0x42   :  { %737 = shalt.err (!%p734_p3)
}
  0x43   :  { %65 = dma.hbm_to_vmem [thread:$0]  %s928_s5, 2048, %s60_s17, [#allocation9], %s769_s11, %s769_s11, %s770_s12  }
  0x44   :  { %760 = dma.done.wait [#allocation3], 128  }
  0x45   :  { %761 = vsyncadd [#allocation3], 4294967168 }
  0x46   :  { %762 = dma.done.wait [#allocation6], 4096  }
  0x47   :  { %763 = vsyncadd [#allocation6], 4294963200 }
  0x48   :  { %764 = dma.done.wait [#allocation9], 2048  }
  0x49   :  { %765 = vsyncadd [#allocation9], 4294965248  ;;  %v774_v0 = vmov 0.0|0.0   ;;  %vm775_vm0 = vmmov 0   ;;  %v776_v1 = vmov 0.0   ;;  %v81_v2 = vld [vmem:[#allocation5] sm:$0xff] }
  0x4a   :  { %560 = vmatprep.subr.bf16.mxu0 %v774_v0  ;;  %487 = vmatprep.mubr.msk.f32.mxu0 %vm775_vm0, %v776_v1  ;;  %v82_v3 = vld [vmem:[#allocation5 + $0x8] sm:$0xff]  ;;  %v83_v4 = vld [vmem:[#allocation5 + $0x10] sm:$0xff]  ;;  %v84_v6 = vld [vmem:[#allocation5 + $0x18] sm:$0xff] }
  0x4b   :  { %584 = vmatprep.subr.bf16.mxu1 %v774_v0  ;;  %522 = vmatprep.mubr.msk.f32.mxu1 %vm775_vm0, %v776_v1  ;;  %v561_v5 = vpack.c.bf16 %v82_v3, %v81_v2  ;;  %v564_v7 = vpack.c.bf16 %v84_v6, %v83_v4  ;;  %v85_v8 = vld [vmem:[#allocation5 + $0x20] sm:$0xff]  ;;  %v86_v9 = vld [vmem:[#allocation5 + $0x28] sm:$0xff]  ;;  %v182_v12 = vld [vmem:[#allocation7 + $0x10] sm:$0xff] }
  0x4c   :  { %v180_v10 = vld [vmem:[#allocation7] sm:$0xff]  ;;  %v181_v11 = vld [vmem:[#allocation7 + $0x8] sm:$0xff]  ;;  %v183_v13 = vld [vmem:[#allocation7 + $0x18] sm:$0xff]  ;;  %v567_v14 = vpack.c.bf16 %v86_v9, %v85_v8 }
  0x4d   :  { %562 = vmatpush3.bf16.msra.mxu0 %v561_v5  ;;  %v585_v15 = vpack.c.bf16 %v181_v11, %v180_v10  ;;  %v87_v16 = vld [vmem:[#allocation5 + $0x30] sm:$0xff]  ;;  %v88_v17 = vld [vmem:[#allocation5 + $0x38] sm:$0xff]  ;;  %v588_v18 = vpack.c.bf16 %v183_v13, %v182_v12  ;;  %v184_v19 = vld [vmem:[#allocation7 + $0x20] sm:$0xff] }
  0x4e   :  { %563 = vmatprep.subr.bf16.mxu0 %v774_v0  ;;  %v185_v20 = vld [vmem:[#allocation7 + $0x28] sm:$0xff]  ;;  %v570_v21 = vpack.c.bf16 %v88_v17, %v87_v16  ;;  %v89_v22 = vld [vmem:[#allocation5 + $0x40] sm:$0xff]  ;;  %v91_v26 = vld [vmem:[#allocation5 + $0x50] sm:$0xff] }
  0x4f   :  { %586 = vmatpush3.bf16.msra.mxu1 %v585_v15  ;;  %v90_v23 = vld [vmem:[#allocation5 + $0x48] sm:$0xff]  ;;  %v591_v24 = vpack.c.bf16 %v185_v20, %v184_v19  ;;  %v92_v27 = vld [vmem:[#allocation5 + $0x58] sm:$0xff]  ;;  %v93_v29 = vld [vmem:[#allocation5 + $0x60] sm:$0xff] }
  0x50   :  { %587 = vmatprep.subr.bf16.mxu1 %v774_v0  ;;  %v573_v25 = vpack.c.bf16 %v90_v23, %v89_v22  ;;  %v576_v28 = vpack.c.bf16 %v92_v27, %v91_v26  ;;  %v94_v30 = vld [vmem:[#allocation5 + $0x68] sm:$0xff]  ;;  %v95_v32 = vld [vmem:[#allocation5 + $0x70] sm:$0xff]  ;;  %v96_v33 = vld [vmem:[#allocation5 + $0x78] sm:$0xff] }
  0x51   :  { %565 = vmatpush3.bf16.msra.mxu0 %v564_v7  ;;  %v579_v31 = vpack.c.bf16 %v94_v30, %v93_v29  ;;  %v582_v34 = vpack.c.bf16 %v96_v33, %v95_v32  ;;  %v80_v35 = vld [vmem:[#allocation2] sm:$0xff]  ;;  %v186_v36 = vld [vmem:[#allocation7 + $0x30] sm:$0xff]  ;;  %v188_v39 = vld [vmem:[#allocation7 + $0x40] sm:$0xff] }
  0x52   :  { %566 = vmatprep.subr.bf16.mxu0 %v774_v0  ;;  %v187_v37 = vld [vmem:[#allocation7 + $0x38] sm:$0xff]  ;;  %v189_v40 = vld [vmem:[#allocation7 + $0x48] sm:$0xff]  ;;  %v190_v42 = vld [vmem:[#allocation7 + $0x50] sm:$0xff] }
  0x53   :  { %589 = vmatpush3.bf16.msra.mxu1 %v588_v18  ;;  %v594_v38 = vpack.c.bf16 %v187_v37, %v186_v36  ;;  %v597_v41 = vpack.c.bf16 %v189_v40, %v188_v39  ;;  %v191_v43 = vld [vmem:[#allocation7 + $0x58] sm:$0xff]  ;;  %v192_v44 = vld [vmem:[#allocation7 + $0x60] sm:$0xff]  ;;  %v193_v46 = vld [vmem:[#allocation7 + $0x68] sm:$0xff] }
  0x54   :  { %590 = vmatprep.subr.bf16.mxu1 %v774_v0  ;;  %v600_v45 = vpack.c.bf16 %v191_v43, %v190_v42  ;;  %v603_v47 = vpack.c.bf16 %v193_v46, %v192_v44  ;;  %v194_v48 = vld [vmem:[#allocation7 + $0x70] sm:$0xff]  ;;  %v195_v49 = vld [vmem:[#allocation7 + $0x78] sm:$0xff]  ;;  %v279_v51 = vld [vmem:[#allocation8] sm:$0xff] }
  0x55   :  { %568 = vmatpush3.bf16.msra.mxu0 %v567_v14  ;;  %v606_v50 = vpack.c.bf16 %v195_v49, %v194_v48  ;;  %v280_v52 = vld [vmem:[#allocation8 + $0x8] sm:$0xff]  ;;  %v281_v53 = vld [vmem:[#allocation8 + $0x10] sm:$0xff]  ;;  %v282_v55 = vld [vmem:[#allocation8 + $0x18] sm:$0xff] }
  0x56   :  { %569 = vmatprep.subr.bf16.mxu0 %v774_v0  ;;  %v609_v54 = vpack.c.bf16 %v280_v52, %v279_v51  ;;  %v612_v56 = vpack.c.bf16 %v282_v55, %v281_v53  ;;  %v283_v57 = vld [vmem:[#allocation8 + $0x20] sm:$0xff]  ;;  %v284_v58 = vld [vmem:[#allocation8 + $0x28] sm:$0xff]  ;;  %v399_v60 = vld [vmem:[%s925_s2] ss:$0 sm:$0xff] }
  0x57   :  { %592 = vmatpush3.bf16.msra.mxu1 %v591_v24  ;;  %v615_v59 = vpack.c.bf16 %v284_v58, %v283_v57  ;;  %v285_v6 = vld [vmem:[#allocation8 + $0x30] sm:$0xff]  ;;  %v286_v7 = vld [vmem:[#allocation8 + $0x38] sm:$0xff]  ;;  %v287_v9 = vld [vmem:[#allocation8 + $0x40] sm:$0xff] }
  0x58   :  { %593 = vmatprep.subr.bf16.mxu1 %v774_v0  ;;  %v618_v8 = vpack.c.bf16 %v286_v7, %v285_v6  ;;  %v288_v10 = vld [vmem:[#allocation8 + $0x48] sm:$0xff]  ;;  %v289_v12 = vld [vmem:[#allocation8 + $0x50] sm:$0xff]  ;;  %v290_v13 = vld [vmem:[#allocation8 + $0x58] sm:$0xff] }
  0x59   :  { %571 = vmatpush3.bf16.msra.mxu0 %v570_v21  ;;  %v621_v11 = vpack.c.bf16 %v288_v10, %v287_v9  ;;  %v291_v14 = vld [vmem:[#allocation8 + $0x60] sm:$0xff]  ;;  %v624_v15 = vpack.c.bf16 %v290_v13, %v289_v12  ;;  %v292_v16 = vld [vmem:[#allocation8 + $0x68] sm:$0xff]  ;;  %v293_v18 = vld [vmem:[#allocation8 + $0x70] sm:$0xff] }
  0x5a   :  { %572 = vmatprep.subr.bf16.mxu0 %v774_v0  ;;  %v627_v17 = vpack.c.bf16 %v292_v16, %v291_v14  ;;  %v294_v19 = vld [vmem:[#allocation8 + $0x78] sm:$0xff] }
  0x5b   :  { %595 = vmatpush3.bf16.msra.mxu1 %v594_v38  ;;  %v630_v20 = vpack.c.bf16 %v294_v19, %v293_v18  ;;  %v401_v21 = vld [vmem:[%s927_s4] ss:$0 sm:$0xff]  ;;  %s777_s4 = smov [#allocation10]  }
  0x5c   :  { %596 = vmatprep.subr.bf16.mxu1 %v774_v0  ;;  %s388_s28 = sshll.u32 %s777_s4, 4  ;;  %s389_s28 = int_to_ptr.vmem [resolvable:$true] %s388_s28 }
  0x5d   :  { %574 = vmatpush3.bf16.msra.mxu0 %v573_v25  ;;  %s738_s29 = scalar_lea.vmem %s389_s28, 128  ;;  %p743_p5 = scmp.lt.s32.totalorder %s389_s28, %s389_s28 }
  0x5e   :  { %575 = vmatprep.subr.bf16.mxu0 %v774_v0  ;;  %p739_p4 = scmp.ne.s32.totalorder %s389_s28, %s738_s29  ;;  %p744_p6 = scmp.lt.s32.totalorder %s738_s29, %s738_s29 }
  0x5f   :  { %598 = vmatpush3.bf16.msra.mxu1 %v597_v41 }
  0x60   :  { %599 = vmatprep.subr.bf16.mxu1 %v774_v0  ;;  %p745_p7 = por %p744_p6, %p743_p5 }
  0x61   :  { %577 = vmatpush3.bf16.msra.mxu0 %v576_v28 }
  0x62   :  { %578 = vmatprep.subr.bf16.mxu0 %v774_v0  ;;  %p746_p8 = pnand %p745_p7, %p739_p4 }
  0x63   :  { %601 = vmatpush3.bf16.msra.mxu1 %v600_v45 }
  0x64   :  { %602 = vmatprep.subr.bf16.mxu1 %v774_v0 }
  0x65   :  { %580 = vmatpush3.bf16.msra.mxu0 %v579_v31 }
  0x66   :  { %581 = vmatprep.subr.bf16.mxu0 %v774_v0 }
  0x67   :  { %604 = vmatpush3.bf16.msra.mxu1 %v603_v47 }
  0x68   :  { %605 = vmatprep.subr.bf16.mxu1 %v774_v0 }
  0x69   :  { %583 = vmatpush3.bf16.msra.mxu0 %v582_v34 }
  0x6a   :  { %608 = vmatprep.subr.bf16.mxu0 %v774_v0 }
  0x6b   :  { %607 = vmatpush3.bf16.msra.mxu1 %v606_v50 }
  0x6c   :  { %488 = vmatmul.mubr.f32.vlgmr.msra.gmra.mrb[0].mxu0 %v80_v35 }
  0x6d   :  { %557 = vmatprep.mubr.msk.f32.mxu0 %vm775_vm0, %v776_v1  ;;  %610 = vmatpush3.bf16.msra.mxu0 %v609_v54 }
  0x6e   :  { %611 = vmatprep.subr.bf16.mxu0 %v774_v0 }
  0x71   :  { %613 = vmatpush3.bf16.msra.mxu0 %v612_v56 }
  0x72   :  { %614 = vmatprep.subr.bf16.mxu0 %v774_v0 }
  0x75   :  { %616 = vmatpush3.bf16.msra.mxu0 %v615_v59 }
  0x76   :  { %617 = vmatprep.subr.bf16.mxu0 %v774_v0 }
  0x79   :  { %619 = vmatpush3.bf16.msra.mxu0 %v618_v8 }
  0x7a   :  { %620 = vmatprep.subr.bf16.mxu0 %v774_v0 }
  0x7d   :  { %622 = vmatpush3.bf16.msra.mxu0 %v621_v11 }
  0x7e   :  { %623 = vmatprep.subr.bf16.mxu0 %v774_v0 }
  0x81   :  { %625 = vmatpush3.bf16.msra.mxu0 %v624_v15 }
  0x82   :  { %626 = vmatprep.subr.bf16.mxu0 %v774_v0 }
  0x85   :  { %628 = vmatpush3.bf16.msra.mxu0 %v627_v17 }
  0x86   :  { %629 = vmatprep.subr.bf16.mxu0 %v774_v0  ;;  %v403_v0 = vld [vmem:[%s929_s6] ss:$0 sm:$0xff] }
  0x89   :  { %631 = vmatpush3.bf16.msra.mxu0 %v630_v20 }
 0x13f   :  { %v170_v61 = vpop.f32.mrb[0].mxu0 }
 0x140   :  { %v171_v62 = vadd.f32 %v399_v60, %v170_v61  ;;  %v489_v63 = vpop.f32.mrb[1].mxu0 }
 0x142   :  { %v175_v1 = vmin.f32 %v171_v62, 0.0  ;;  %vm174_vm1 = vcmp.gt.f32.partialorder %v171_v62, 0.0 }
 0x144   :  { %v176_v2 = vmul.f32 1.442695, %v175_v1 }
 0x146   :  { %642 = vpow2.f32 %v176_v2 }
 0x150   :  { %v643_v3 = vpop.eup %642 }
 0x151   :  { %v400_v4 = vadd.f32 -1.0, %v643_v3 }
 0x153   :  { %v179_v5 = vsel %vm174_vm1, %v171_v62, %v400_v4 }
 0x154   :  { %523 = vmatmul.mubr.f32.vlgmr.msra.gmra.mrb[0].mxu1 %v179_v5 }
 0x227   :  { %v269_v22 = vpop.f32.mrb[0].mxu1 }
 0x228   :  { %v270_v23 = vadd.f32 %v401_v21, %v269_v22  ;;  %v524_v24 = vpop.f32.mrb[1].mxu1 }
 0x22a   :  { %v274_v25 = vmin.f32 %v270_v23, 0.0  ;;  %vm273_vm2 = vcmp.gt.f32.partialorder %v270_v23, 0.0 }
 0x22c   :  { %v275_v26 = vmul.f32 1.442695, %v274_v25 }
 0x22e   :  { %644 = vpow2.f32 %v275_v26 }
 0x238   :  { %v645_v27 = vpop.eup %644 }
 0x239   :  { %v402_v28 = vadd.f32 -1.0, %v645_v27 }
 0x23b   :  { %v278_v29 = vsel %vm273_vm2, %v270_v23, %v402_v28 }
 0x23c   :  { %558 = vmatmul.mubr.f32.vlgmr.msra.gmra.mrb[2].mxu0 %v278_v29 }
 0x30f   :  { %v368_v30 = vpop.f32.mrb[2].mxu0 }
 0x310   :  { %v369_v31 = vadd.f32 %v403_v0, %v368_v30  ;;  %v559_v32 = vpop.f32.mrb[3].mxu0 }
 0x312   :  { %372 = vmax.xlane.f32.xlu0 %v369_v31 }
 0x39f   :  { %v373_v33 = vpop.xlane.xlu0 %372 }
 0x3a0   :  { %v374_v34 = vsub.f32 %v369_v31, %v373_v33 }
 0x3a2   :  { %v375_v35 = vmul.f32 1.442695, %v374_v34 }
 0x3a4   :  { %646 = vpow2.f32 %v375_v35 }
 0x3ae   :  { %v647_v36 = vpop.eup %646 }
 0x3af   :  { %377 = vadd.xlane.f32.xlu0 %v647_v36 }
 0x43c   :  { %v378_v37 = vpop.xlane.xlu0 %377 }
 0x43d   :  { %648 = vrcp.f32 %v378_v37 }
 0x447   :  { %v649_v38 = vpop.eup %648 }
 0x448   :  { %v380_v39 = vmul.f32 %v649_v38, %v647_v36 }
 0x44a   :  { %381 = vst [vmem:[#allocation10] sm:$0xff] %v380_v39 }
 0x44b   :  { %749 = shalt.err (!%p746_p8)
}
 0x44c   :  { %s750_s8 = scalar_lea.hbm %s930_s7, 128 }
 0x44d   :  { %p751_p9 = scmp.ne.s32.totalorder %s930_s7, %s750_s8  ;;  %p754_p10 = scmp.lt.u32.totalorder %s750_s8, %s930_s7 }
 0x44f   :  { %p756_p11 = pnand %p754_p10, %p751_p9 }
 0x451   :  { %759 = shalt.err (!%p756_p11)
}
 0x452   :  { %391 = dma.vmem_to_hbm [thread:$0]  %s389_s28, 128, %s930_s7, [#allocation4]  }
 0x453   :  { %766 = dma.done.wait [#allocation4], 128  }
 0x454   :  { %767 = vsyncadd [#allocation4], 4294967168 }
 0x455   :  { %395 = vsyncpa [#allocation3], 1 }
 0x456   :  { %396 = vsyncpa [#allocation6], 1 }
 0x457   :  { %397 = vsyncpa [#allocation9], 1 }
 0x458   :  { %398 = vsyncpa [#allocation4], 1 }

// kernel: tpu_custom_call.1
= control target key start
LH: loop header
LB: loop body
LE: loop exit
PB: predicated region body
PF: predicated region fallthrough
CT: control target
= control target key end

     0   :  { %12 = vsyncpa [#allocation3], 0  ;;  %s923_s0 = inlined_call_operand.hbm [shape: f32[8,128], index: 0, kind: input, shape index: {}]   ;;  %s924_s1 = inlined_call_operand.hbm [shape: f32[128,128], index: 1, kind: input, shape index: {}]   ;;  %s925_s2 = inlined_call_operand.vmem [shape: f32[1,128], index: 2, kind: input, shape index: {}]   ;;  %s926_s3 = inlined_call_operand.hbm [shape: f32[128,128], index: 3, kind: input, shape index: {}]   ;;  %s927_s4 = inlined_call_operand.vmem [shape: f32[1,128], index: 4, kind: input, shape index: {}]   ;;  %s928_s5 = inlined_call_operand.hbm [shape: f32[128,128], index: 5, kind: input, shape index: {}]   ;;  %s929_s6 = inlined_call_operand.vmem [shape: f32[1,128], index: 6, kind: input, shape index: {}]   ;;  %s930_s7 = inlined_call_operand.hbm [shape: f32[8,128], index: 7, kind: output, shape index: {}]  }
   0x1   :  { %13 = vsyncpa [#allocation6], 0 }
   0x2   :  { %14 = vsyncpa [#allocation9], 0 }
   0x3   :  { %15 = vsyncpa [#allocation4], 0  ;;  %s768_s24 = smov [#allocation5]   ;;  %s650_s28 = scalar_lea.hbm %s924_s1, 2048 }
   0x4   :  { %s31_s25 = sshll.u32 %s768_s24, 4  ;;  %p651_p0 = scmp.ne.s32.totalorder %s924_s1, %s650_s28  ;;  %s32_s25 = int_to_ptr.vmem [resolvable:$true] %s31_s25 }
   0x5   :  { %p654_p1 = scmp.lt.u32.totalorder %s650_s28, %s924_s1 }
   0x7   :  { %p656_p2 = pnand %p654_p1, %p651_p0 }
   0x9   :  { %659 = shalt.err (!%p656_p2)
}
   0xa   :  { %s660_s10 = scalar_lea.vmem %s32_s25, 2048  ;;  %p665_p4 = scmp.lt.s32.totalorder %s32_s25, %s32_s25 }
   0xb   :  { %p661_p3 = scmp.ne.s32.totalorder %s32_s25, %s660_s10  ;;  %p666_p5 = scmp.lt.s32.totalorder %s660_s10, %s660_s10 }
   0xd   :  { %p667_p6 = por %p666_p5, %p665_p4 }
   0xf   :  { %p668_p7 = pnand %p667_p6, %p661_p3 }
  0x11   :  { %671 = shalt.err (!%p668_p7)
}
  0x12   :  { %s769_s11 = smov 128   ;;  %s770_s12 = smov 8  }
  0x13   :  { %37 = dma.hbm_to_vmem [thread:$0]  %s924_s1, 2048, %s32_s25, [#allocation6], %s769_s11, %s769_s11, %s770_s12  }
  0x14   :  { %s771_s15 = smov [#allocation2]   ;;  %s772_s17 = smov [#allocation7]  }
  0x15   :  { %s22_s16 = sshll.u32 %s771_s15, 4  ;;  %s45_s18 = sshll.u32 %s772_s17, 4  ;;  %s23_s16 = int_to_ptr.vmem [resolvable:$true] %s22_s16  ;;  %s46_s18 = int_to_ptr.vmem [resolvable:$true] %s45_s18 }
  0x16   :  { %s672_s21 = scalar_lea.hbm %s923_s0, 128 }
  0x17   :  { %p673_p8 = scmp.ne.s32.totalorder %s923_s0, %s672_s21  ;;  %p676_p9 = scmp.lt.u32.totalorder %s672_s21, %s923_s0 }
  0x19   :  { %p678_p10 = pnand %p676_p9, %p673_p8 }
  0x1b   :  { %681 = shalt.err (!%p678_p10)
}
  0x1c   :  { %s682_s1 = scalar_lea.vmem %s23_s16, 128  ;;  %p687_p12 = scmp.lt.s32.totalorder %s23_s16, %s23_s16 }
  0x1d   :  { %p683_p11 = scmp.ne.s32.totalorder %s23_s16, %s682_s1  ;;  %p688_p13 = scmp.lt.s32.totalorder %s682_s1, %s682_s1 }
  0x1f   :  { %p689_p0 = por %p688_p13, %p687_p12 }
  0x21   :  { %p690_p1 = pnand %p689_p0, %p683_p11 }
  0x23   :  { %693 = shalt.err (!%p690_p1)
}
  0x24   :  { %25 = dma.hbm_to_vmem [thread:$0]  %s923_s0, 128, %s23_s16, [#allocation3]  }
  0x25   :  { %s694_s30 = scalar_lea.hbm %s926_s3, 2048 }
  0x26   :  { %p695_p2 = scmp.ne.s32.totalorder %s926_s3, %s694_s30  ;;  %p698_p3 = scmp.lt.u32.totalorder %s694_s30, %s926_s3 }
  0x28   :  { %p700_p4 = pnand %p698_p3, %p695_p2 }
  0x2a   :  { %703 = shalt.err (!%p700_p4)
}
  0x2b   :  { %s704_s14 = scalar_lea.vmem %s46_s18, 2048  ;;  %p709_p6 = scmp.lt.s32.totalorder %s46_s18, %s46_s18 }
  0x2c   :  { %p705_p5 = scmp.ne.s32.totalorder %s46_s18, %s704_s14  ;;  %p710_p7 = scmp.lt.s32.totalorder %s704_s14, %s704_s14 }
  0x2e   :  { %p711_p8 = por %p710_p7, %p709_p6 }
  0x30   :  { %p712_p9 = pnand %p711_p8, %p705_p5 }
  0x32   :  { %715 = shalt.err (!%p712_p9)
}
  0x33   :  { %51 = dma.hbm_to_vmem [thread:$0]  %s926_s3, 2048, %s46_s18, [#allocation6], %s769_s11, %s769_s11, %s770_s12  }
  0x34   :  { %s773_s16 = smov [#allocation8]   ;;  %s716_s21 = scalar_lea.hbm %s928_s5, 2048 }
  0x35   :  { %s59_s17 = sshll.u32 %s773_s16, 4  ;;  %p717_p10 = scmp.ne.s32.totalorder %s928_s5, %s716_s21  ;;  %s60_s17 = int_to_ptr.vmem [resolvable:$true] %s59_s17 }
  0x36   :  { %p720_p11 = scmp.lt.u32.totalorder %s716_s21, %s928_s5 }
  0x38   :  { %p722_p12 = pnand %p720_p11, %p717_p10 }
  0x3a   :  { %725 = shalt.err (!%p722_p12)
}
  0x3b   :  { %s726_s1 = scalar_lea.vmem %s60_s17, 2048  ;;  %p731_p0 = scmp.lt.s32.totalorder %s60_s17, %s60_s17 }
  0x3c   :  { %p727_p13 = scmp.ne.s32.totalorder %s60_s17, %s726_s1  ;;  %p732_p1 = scmp.lt.s32.totalorder %s726_s1, %s726_s1 }
  0x3e   :  { %p733_p2 = por %p732_p1, %p731_p0 }
  0x40   :  { %p734_p3 = pnand %p733_p2, %p727_p13 }
  0x42   :  { %737 = shalt.err (!%p734_p3)
}
  0x43   :  { %65 = dma.hbm_to_vmem [thread:$0]  %s928_s5, 2048, %s60_s17, [#allocation9], %s769_s11, %s769_s11, %s770_s12  }
  0x44   :  { %760 = dma.done.wait [#allocation3], 128  }
  0x45   :  { %761 = vsyncadd [#allocation3], 4294967168 }
  0x46   :  { %762 = dma.done.wait [#allocation6], 4096  }
  0x47   :  { %763 = vsyncadd [#allocation6], 4294963200 }
  0x48   :  { %764 = dma.done.wait [#allocation9], 2048  }
  0x49   :  { %765 = vsyncadd [#allocation9], 4294965248  ;;  %v774_v0 = vmov 0.0|0.0   ;;  %vm775_vm0 = vmmov 0   ;;  %v776_v1 = vmov 0.0   ;;  %v81_v2 = vld [vmem:[#allocation5] sm:$0xff] }
  0x4a   :  { %560 = vmatprep.subr.bf16.mxu0 %v774_v0  ;;  %487 = vmatprep.mubr.msk.f32.mxu0 %vm775_vm0, %v776_v1  ;;  %v82_v3 = vld [vmem:[#allocation5 + $0x8] sm:$0xff]  ;;  %v83_v4 = vld [vmem:[#allocation5 + $0x10] sm:$0xff]  ;;  %v84_v6 = vld [vmem:[#allocation5 + $0x18] sm:$0xff] }
  0x4b   :  { %584 = vmatprep.subr.bf16.mxu1 %v774_v0  ;;  %522 = vmatprep.mubr.msk.f32.mxu1 %vm775_vm0, %v776_v1  ;;  %v561_v5 = vpack.c.bf16 %v82_v3, %v81_v2  ;;  %v564_v7 = vpack.c.bf16 %v84_v6, %v83_v4  ;;  %v85_v8 = vld [vmem:[#allocation5 + $0x20] sm:$0xff]  ;;  %v86_v9 = vld [vmem:[#allocation5 + $0x28] sm:$0xff]  ;;  %v182_v12 = vld [vmem:[#allocation7 + $0x10] sm:$0xff] }
  0x4c   :  { %v180_v10 = vld [vmem:[#allocation7] sm:$0xff]  ;;  %v181_v11 = vld [vmem:[#allocation7 + $0x8] sm:$0xff]  ;;  %v183_v13 = vld [vmem:[#allocation7 + $0x18] sm:$0xff]  ;;  %v567_v14 = vpack.c.bf16 %v86_v9, %v85_v8 }
  0x4d   :  { %562 = vmatpush3.bf16.msra.mxu0 %v561_v5  ;;  %v585_v15 = vpack.c.bf16 %v181_v11, %v180_v10  ;;  %v87_v16 = vld [vmem:[#allocation5 + $0x30] sm:$0xff]  ;;  %v88_v17 = vld [vmem:[#allocation5 + $0x38] sm:$0xff]  ;;  %v588_v18 = vpack.c.bf16 %v183_v13, %v182_v12  ;;  %v184_v19 = vld [vmem:[#allocation7 + $0x20] sm:$0xff] }
  0x4e   :  { %563 = vmatprep.subr.bf16.mxu0 %v774_v0  ;;  %v185_v20 = vld [vmem:[#allocation7 + $0x28] sm:$0xff]  ;;  %v570_v21 = vpack.c.bf16 %v88_v17, %v87_v16  ;;  %v89_v22 = vld [vmem:[#allocation5 + $0x40] sm:$0xff]  ;;  %v91_v26 = vld [vmem:[#allocation5 + $0x50] sm:$0xff] }
  0x4f   :  { %586 = vmatpush3.bf16.msra.mxu1 %v585_v15  ;;  %v90_v23 = vld [vmem:[#allocation5 + $0x48] sm:$0xff]  ;;  %v591_v24 = vpack.c.bf16 %v185_v20, %v184_v19  ;;  %v92_v27 = vld [vmem:[#allocation5 + $0x58] sm:$0xff]  ;;  %v93_v29 = vld [vmem:[#allocation5 + $0x60] sm:$0xff] }
  0x50   :  { %587 = vmatprep.subr.bf16.mxu1 %v774_v0  ;;  %v573_v25 = vpack.c.bf16 %v90_v23, %v89_v22  ;;  %v576_v28 = vpack.c.bf16 %v92_v27, %v91_v26  ;;  %v94_v30 = vld [vmem:[#allocation5 + $0x68] sm:$0xff]  ;;  %v95_v32 = vld [vmem:[#allocation5 + $0x70] sm:$0xff]  ;;  %v96_v33 = vld [vmem:[#allocation5 + $0x78] sm:$0xff] }
  0x51   :  { %565 = vmatpush3.bf16.msra.mxu0 %v564_v7  ;;  %v579_v31 = vpack.c.bf16 %v94_v30, %v93_v29  ;;  %v582_v34 = vpack.c.bf16 %v96_v33, %v95_v32  ;;  %v80_v35 = vld [vmem:[#allocation2] sm:$0xff]  ;;  %v186_v36 = vld [vmem:[#allocation7 + $0x30] sm:$0xff]  ;;  %v188_v39 = vld [vmem:[#allocation7 + $0x40] sm:$0xff] }
  0x52   :  { %566 = vmatprep.subr.bf16.mxu0 %v774_v0  ;;  %v187_v37 = vld [vmem:[#allocation7 + $0x38] sm:$0xff]  ;;  %v189_v40 = vld [vmem:[#allocation7 + $0x48] sm:$0xff]  ;;  %v190_v42 = vld [vmem:[#allocation7 + $0x50] sm:$0xff] }
  0x53   :  { %589 = vmatpush3.bf16.msra.mxu1 %v588_v18  ;;  %v594_v38 = vpack.c.bf16 %v187_v37, %v186_v36  ;;  %v597_v41 = vpack.c.bf16 %v189_v40, %v188_v39  ;;  %v191_v43 = vld [vmem:[#allocation7 + $0x58] sm:$0xff]  ;;  %v192_v44 = vld [vmem:[#allocation7 + $0x60] sm:$0xff]  ;;  %v193_v46 = vld [vmem:[#allocation7 + $0x68] sm:$0xff] }
  0x54   :  { %590 = vmatprep.subr.bf16.mxu1 %v774_v0  ;;  %v600_v45 = vpack.c.bf16 %v191_v43, %v190_v42  ;;  %v603_v47 = vpack.c.bf16 %v193_v46, %v192_v44  ;;  %v194_v48 = vld [vmem:[#allocation7 + $0x70] sm:$0xff]  ;;  %v195_v49 = vld [vmem:[#allocation7 + $0x78] sm:$0xff]  ;;  %v279_v51 = vld [vmem:[#allocation8] sm:$0xff] }
  0x55   :  { %568 = vmatpush3.bf16.msra.mxu0 %v567_v14  ;;  %v606_v50 = vpack.c.bf16 %v195_v49, %v194_v48  ;;  %v280_v52 = vld [vmem:[#allocation8 + $0x8] sm:$0xff]  ;;  %v281_v53 = vld [vmem:[#allocation8 + $0x10] sm:$0xff]  ;;  %v282_v55 = vld [vmem:[#allocation8 + $0x18] sm:$0xff] }
  0x56   :  { %569 = vmatprep.subr.bf16.mxu0 %v774_v0  ;;  %v609_v54 = vpack.c.bf16 %v280_v52, %v279_v51  ;;  %v612_v56 = vpack.c.bf16 %v282_v55, %v281_v53  ;;  %v283_v57 = vld [vmem:[#allocation8 + $0x20] sm:$0xff]  ;;  %v284_v58 = vld [vmem:[#allocation8 + $0x28] sm:$0xff]  ;;  %v399_v60 = vld [vmem:[%s925_s2] ss:$0 sm:$0xff] }
  0x57   :  { %592 = vmatpush3.bf16.msra.mxu1 %v591_v24  ;;  %v615_v59 = vpack.c.bf16 %v284_v58, %v283_v57  ;;  %v285_v6 = vld [vmem:[#allocation8 + $0x30] sm:$0xff]  ;;  %v286_v7 = vld [vmem:[#allocation8 + $0x38] sm:$0xff]  ;;  %v287_v9 = vld [vmem:[#allocation8 + $0x40] sm:$0xff] }
  0x58   :  { %593 = vmatprep.subr.bf16.mxu1 %v774_v0  ;;  %v618_v8 = vpack.c.bf16 %v286_v7, %v285_v6  ;;  %v288_v10 = vld [vmem:[#allocation8 + $0x48] sm:$0xff]  ;;  %v289_v12 = vld [vmem:[#allocation8 + $0x50] sm:$0xff]  ;;  %v290_v13 = vld [vmem:[#allocation8 + $0x58] sm:$0xff] }
  0x59   :  { %571 = vmatpush3.bf16.msra.mxu0 %v570_v21  ;;  %v621_v11 = vpack.c.bf16 %v288_v10, %v287_v9  ;;  %v291_v14 = vld [vmem:[#allocation8 + $0x60] sm:$0xff]  ;;  %v624_v15 = vpack.c.bf16 %v290_v13, %v289_v12  ;;  %v292_v16 = vld [vmem:[#allocation8 + $0x68] sm:$0xff]  ;;  %v293_v18 = vld [vmem:[#allocation8 + $0x70] sm:$0xff] }
  0x5a   :  { %572 = vmatprep.subr.bf16.mxu0 %v774_v0  ;;  %v627_v17 = vpack.c.bf16 %v292_v16, %v291_v14  ;;  %v294_v19 = vld [vmem:[#allocation8 + $0x78] sm:$0xff] }
  0x5b   :  { %595 = vmatpush3.bf16.msra.mxu1 %v594_v38  ;;  %v630_v20 = vpack.c.bf16 %v294_v19, %v293_v18  ;;  %v401_v21 = vld [vmem:[%s927_s4] ss:$0 sm:$0xff]  ;;  %s777_s4 = smov [#allocation10]  }
  0x5c   :  { %596 = vmatprep.subr.bf16.mxu1 %v774_v0  ;;  %s388_s28 = sshll.u32 %s777_s4, 4  ;;  %s389_s28 = int_to_ptr.vmem [resolvable:$true] %s388_s28 }
  0x5d   :  { %574 = vmatpush3.bf16.msra.mxu0 %v573_v25  ;;  %s738_s29 = scalar_lea.vmem %s389_s28, 128  ;;  %p743_p5 = scmp.lt.s32.totalorder %s389_s28, %s389_s28 }
  0x5e   :  { %575 = vmatprep.subr.bf16.mxu0 %v774_v0  ;;  %p739_p4 = scmp.ne.s32.totalorder %s389_s28, %s738_s29  ;;  %p744_p6 = scmp.lt.s32.totalorder %s738_s29, %s738_s29 }
  0x5f   :  { %598 = vmatpush3.bf16.msra.mxu1 %v597_v41 }
  0x60   :  { %599 = vmatprep.subr.bf16.mxu1 %v774_v0  ;;  %p745_p7 = por %p744_p6, %p743_p5 }
  0x61   :  { %577 = vmatpush3.bf16.msra.mxu0 %v576_v28 }
  0x62   :  { %578 = vmatprep.subr.bf16.mxu0 %v774_v0  ;;  %p746_p8 = pnand %p745_p7, %p739_p4 }
  0x63   :  { %601 = vmatpush3.bf16.msra.mxu1 %v600_v45 }
  0x64   :  { %602 = vmatprep.subr.bf16.mxu1 %v774_v0 }
  0x65   :  { %580 = vmatpush3.bf16.msra.mxu0 %v579_v31 }
  0x66   :  { %581 = vmatprep.subr.bf16.mxu0 %v774_v0 }
  0x67   :  { %604 = vmatpush3.bf16.msra.mxu1 %v603_v47 }
  0x68   :  { %605 = vmatprep.subr.bf16.mxu1 %v774_v0 }
  0x69   :  { %583 = vmatpush3.bf16.msra.mxu0 %v582_v34 }
  0x6a   :  { %608 = vmatprep.subr.bf16.mxu0 %v774_v0 }
  0x6b   :  { %607 = vmatpush3.bf16.msra.mxu1 %v606_v50 }
  0x6c   :  { %488 = vmatmul.mubr.f32.vlgmr.msra.gmra.mrb[0].mxu0 %v80_v35 }
  0x6d   :  { %557 = vmatprep.mubr.msk.f32.mxu0 %vm775_vm0, %v776_v1  ;;  %610 = vmatpush3.bf16.msra.mxu0 %v609_v54 }
  0x6e   :  { %611 = vmatprep.subr.bf16.mxu0 %v774_v0 }
  0x71   :  { %613 = vmatpush3.bf16.msra.mxu0 %v612_v56 }
  0x72   :  { %614 = vmatprep.subr.bf16.mxu0 %v774_v0 }
  0x75   :  { %616 = vmatpush3.bf16.msra.mxu0 %v615_v59 }
  0x76   :  { %617 = vmatprep.subr.bf16.mxu0 %v774_v0 }
  0x79   :  { %619 = vmatpush3.bf16.msra.mxu0 %v618_v8 }
  0x7a   :  { %620 = vmatprep.subr.bf16.mxu0 %v774_v0 }
  0x7d   :  { %622 = vmatpush3.bf16.msra.mxu0 %v621_v11 }
  0x7e   :  { %623 = vmatprep.subr.bf16.mxu0 %v774_v0 }
  0x81   :  { %625 = vmatpush3.bf16.msra.mxu0 %v624_v15 }
  0x82   :  { %626 = vmatprep.subr.bf16.mxu0 %v774_v0 }
  0x85   :  { %628 = vmatpush3.bf16.msra.mxu0 %v627_v17 }
  0x86   :  { %629 = vmatprep.subr.bf16.mxu0 %v774_v0  ;;  %v403_v0 = vld [vmem:[%s929_s6] ss:$0 sm:$0xff] }
  0x89   :  { %631 = vmatpush3.bf16.msra.mxu0 %v630_v20 }
 0x13f   :  { %v170_v61 = vpop.f32.mrb[0].mxu0 }
 0x140   :  { %v171_v62 = vadd.f32 %v399_v60, %v170_v61  ;;  %v489_v63 = vpop.f32.mrb[1].mxu0 }
 0x142   :  { %v175_v1 = vmin.f32 %v171_v62, 0.0  ;;  %vm174_vm1 = vcmp.gt.f32.partialorder %v171_v62, 0.0 }
 0x144   :  { %v176_v2 = vmul.f32 1.442695, %v175_v1 }
 0x146   :  { %642 = vpow2.f32 %v176_v2 }
 0x150   :  { %v643_v3 = vpop.eup %642 }
 0x151   :  { %v400_v4 = vadd.f32 -1.0, %v643_v3 }
 0x153   :  { %v179_v5 = vsel %vm174_vm1, %v171_v62, %v400_v4 }
 0x154   :  { %523 = vmatmul.mubr.f32.vlgmr.msra.gmra.mrb[0].mxu1 %v179_v5 }
 0x227   :  { %v269_v22 = vpop.f32.mrb[0].mxu1 }
 0x228   :  { %v270_v23 = vadd.f32 %v401_v21, %v269_v22  ;;  %v524_v24 = vpop.f32.mrb[1].mxu1 }
 0x22a   :  { %v274_v25 = vmin.f32 %v270_v23, 0.0  ;;  %vm273_vm2 = vcmp.gt.f32.partialorder %v270_v23, 0.0 }
 0x22c   :  { %v275_v26 = vmul.f32 1.442695, %v274_v25 }
 0x22e   :  { %644 = vpow2.f32 %v275_v26 }
 0x238   :  { %v645_v27 = vpop.eup %644 }
 0x239   :  { %v402_v28 = vadd.f32 -1.0, %v645_v27 }
 0x23b   :  { %v278_v29 = vsel %vm273_vm2, %v270_v23, %v402_v28 }
 0x23c   :  { %558 = vmatmul.mubr.f32.vlgmr.msra.gmra.mrb[2].mxu0 %v278_v29 }
 0x30f   :  { %v368_v30 = vpop.f32.mrb[2].mxu0 }
 0x310   :  { %v369_v31 = vadd.f32 %v403_v0, %v368_v30  ;;  %v559_v32 = vpop.f32.mrb[3].mxu0 }
 0x312   :  { %372 = vmax.xlane.f32.xlu0 %v369_v31 }
 0x39f   :  { %v373_v33 = vpop.xlane.xlu0 %372 }
 0x3a0   :  { %v374_v34 = vsub.f32 %v369_v31, %v373_v33 }
 0x3a2   :  { %v375_v35 = vmul.f32 1.442695, %v374_v34 }
 0x3a4   :  { %646 = vpow2.f32 %v375_v35 }
 0x3ae   :  { %v647_v36 = vpop.eup %646 }
 0x3af   :  { %377 = vadd.xlane.f32.xlu0 %v647_v36 }
 0x43c   :  { %v378_v37 = vpop.xlane.xlu0 %377 }
 0x43d   :  { %648 = vrcp.f32 %v378_v37 }
 0x447   :  { %v649_v38 = vpop.eup %648 }
 0x448   :  { %v380_v39 = vmul.f32 %v649_v38, %v647_v36 }
 0x44a   :  { %381 = vst [vmem:[#allocation10] sm:$0xff] %v380_v39 }
 0x44b   :  { %749 = shalt.err (!%p746_p8)
}
 0x44c   :  { %s750_s8 = scalar_lea.hbm %s930_s7, 128 }
 0x44d   :  { %p751_p9 = scmp.ne.s32.totalorder %s930_s7, %s750_s8  ;;  %p754_p10 = scmp.lt.u32.totalorder %s750_s8, %s930_s7 }
 0x44f   :  { %p756_p11 = pnand %p754_p10, %p751_p9 }
 0x451   :  { %759 = shalt.err (!%p756_p11)
}
 0x452   :  { %391 = dma.vmem_to_hbm [thread:$0]  %s389_s28, 128, %s930_s7, [#allocation4]  }
 0x453   :  { %766 = dma.done.wait [#allocation4], 128  }
 0x454   :  { %767 = vsyncadd [#allocation4], 4294967168 }
 0x455   :  { %395 = vsyncpa [#allocation3], 1 }
 0x456   :  { %396 = vsyncpa [#allocation6], 1 }
 0x457   :  { %397 = vsyncpa [#allocation9], 1 }
 0x458   :  { %398 = vsyncpa [#allocation4], 1 }

</bundles_post_ra>
